<compile_context>
chip_gen: v7x
topology: tpu7x:2x2x1
jax: 0.10.0
libtpu: 0.0.40
codegen_flags: <defaults>
</compile_context>

<pallas_src>
import jax
import jax.numpy as jnp
import numpy as np
from jax.experimental import pallas as pl
from jax.experimental.pallas import tpu as pltpu

_EPS = 1e-16
_EPS_SQ = 1e-32                      # epsilon used inside the rsqrt (sigma**2 scale)
_THRESH = float(np.sqrt(2.0) / 2.0)
_LANES = 128
_MAX_ROW_TILE = 512                  # 64K boxes / step, ~1 MiB per input block


def _cdiv(a, b):
    return -(-a // b)


def _recip(x):
    """Approximate EUP reciprocal refined with one Newton step.

    A full f32 divide lowers to an EUP reciprocal + ~2 Newton refinements on the
    VPU.  The raw approx reciprocal (~2^-12 rel. error) would force a sloppy
    self-test tolerance, so one Newton step (2 VPU ops) is kept: ~1e-7 relative
    error at roughly half the VPU cost of a divide.
    """
    r = pl.reciprocal(x, approx=True)
    return r * (2.0 - x * r)


def _siou_kernel(pred_ref, tgt_ref, out_ref):
    # pred_ref / tgt_ref: (4, TR, 128); leading axis = coordinate (x1, y1, x2, y2).
    px1, py1, px2, py2 = pred_ref[0], pred_ref[1], pred_ref[2], pred_ref[3]
    tx1, ty1, tx2, ty2 = tgt_ref[0], tgt_ref[1], tgt_ref[2], tgt_ref[3]

    # ---- IoU + enclosure flag ------------------------------------------------
    tlx = jnp.maximum(px1, tx1)
    tly = jnp.maximum(py1, ty1)
    brx = jnp.minimum(px2, tx2)
    bry = jnp.minimum(py2, ty2)

    pred_w = px2 - px1
    pred_h = py2 - py1
    tgt_w = tx2 - tx1
    tgt_h = ty2 - ty1

    area_p = pred_w * pred_h
    area_g = tgt_w * tgt_h

    en = ((tlx < brx) & (tly < bry)).astype(jnp.float32)
    area_i = (brx - tlx) * (bry - tly) * en
    iou = jnp.abs(area_i * _recip(area_p + area_g - area_i + _EPS))

    # ---- angle term (L) --------------------------------------------------------
    # Center deltas without materializing the four centers (saves VPU ops + liveness).
    dcx = 0.5 * ((tx1 - px1) + (tx2 - px2))          # tcx - pcx
    dcy = 0.5 * ((ty1 - py1) + (ty2 - py2))          # tcy - pcy
    # sigma and 1/(sigma+eps) fused into a single EUP rsqrt (abs is redundant
    # since the deltas are squared).
    inv_sigma = jax.lax.rsqrt(dcx * dcx + dcy * dcy + _EPS_SQ)
    x1a = jnp.abs(dcx) * inv_sigma
    x2a = jnp.abs(dcy) * inv_sigma
    sin_alpha = jnp.where(x1a > _THRESH, x2a, x1a)
    # cos(2*arcsin(x) - pi/2) == sin(2*arcsin(x)) == 2*x*sqrt(1 - x^2)
    L = 2.0 * sin_alpha * jnp.sqrt(jnp.maximum(1.0 - sin_alpha * sin_alpha, 0.0))

    # ---- distance loss ---------------------------------------------------------
    cw_box = jnp.maximum(px2, tx2) - jnp.minimum(px1, tx1)
    ch_box = jnp.maximum(py2, ty2) - jnp.minimum(py1, ty1)
    dx = dcx * _recip(cw_box + _EPS)
    dy = dcy * _recip(ch_box + _EPS)
    neg_gamma = L - 2.0                               # -(2 - L)
    # delta = (1 - exp(-gamma*Px)) + (1 - exp(-gamma*Py)); exactly 2 EUP pushes.
    delta = 2.0 - jnp.exp(neg_gamma * (dx * dx)) - jnp.exp(neg_gamma * (dy * dy))

    # ---- shape loss ------------------------------------------------------------
    omiga_w = jnp.abs(pred_w - tgt_w) * _recip(jnp.maximum(pred_w, tgt_w) + _EPS)
    omiga_h = jnp.abs(pred_h - tgt_h) * _recip(jnp.maximum(pred_h, tgt_h) + _EPS)
    ew = 1.0 - jnp.exp(-omiga_w)
    eh = 1.0 - jnp.exp(-omiga_h)
    ew2 = ew * ew
    eh2 = eh * eh
    omiga = ew2 * ew2 + eh2 * eh2                     # (1 - exp(-omiga))**4 per dim

    # ---- combined SIoU loss ----------------------------------------------------
    out_ref[...] = 1.0 - iou + (delta + omiga) * (0.5 * en)


@jax.jit
def siou_loss(pred, target):
    """Pallas SIoU loss.  pred/target: any shape reshapeable to (N, 4)."""
    assert pred.shape[0] == target.shape[0]
    pred = jnp.asarray(pred, jnp.float32).reshape(-1, 4)
    target = jnp.asarray(target, jnp.float32).reshape(-1, 4)
    n = pred.shape[0]

    rows = _cdiv(n, _LANES)          # number of 128-box rows
    n_pad = rows * _LANES

    # Row tile: as large as possible to amortize per-grid-step overhead, but
    #  * keep >=2 grid steps when rows > 8 so ("parallel",) can split the grid
    #    across v7x's two TensorCores,
    #  * cap at 512 rows: 2 x 1 MiB double-buffered inputs + 256 KiB output +
    #    spilled temporaries stay well inside v5e's scoped-VMEM budget.
    if rows <= 8:
        tr = rows                    # full extent (also legal when rows % 8 != 0)
    else:
        tr = min(_MAX_ROW_TILE, _cdiv(_cdiv(rows, 2), 8) * 8)
    grid = (_cdiv(rows, tr),)        # partial trailing block is handled by Pallas

    def stage(x):
        # Single fused XLA pass per input (pad + transpose + reshape) -> (4, rows, 128)
        # coordinate planes.  Padded boxes are all-zero (loss = 1) and sliced off below.
        x = jnp.pad(x, ((0, n_pad - n), (0, 0)))
        return x.T.reshape(4, rows, _LANES)

    out = pl.pallas_call(
        _siou_kernel,
        out_shape=jax.ShapeDtypeStruct((rows, _LANES), jnp.float32),
        grid=grid,
        in_specs=[
            pl.BlockSpec((4, tr, _LANES), lambda i: (0, i, 0)),
            pl.BlockSpec((4, tr, _LANES), lambda i: (0, i, 0)),
        ],
        out_specs=pl.BlockSpec((tr, _LANES), lambda i: (i, 0)),
        compiler_params=pltpu.CompilerParams(
            dimension_semantics=("parallel",),
            vmem_limit_bytes=32 * 1024 * 1024,
        ),
    )(stage(pred), stage(target))

    # Dense lane-aligned output slab; flatten back to the per-box loss vector.
    return out.reshape(-1)[:n]


def _siou_ref(pred, target):
    """Pure-JAX reference mirroring the PyTorch module (with arcsin/cos)."""
    pred = jnp.asarray(pred, jnp.float32).reshape(-1, 4)
    target = jnp.asarray(target, jnp.float32).reshape(-1, 4)
    px1, py1, px2, py2 = pred[:, 0], pred[:, 1], pred[:, 2], pred[:, 3]
    tx1, ty1, tx2, ty2 = target[:, 0], target[:, 1], target[:, 2], target[:, 3]

    tlx, tly = jnp.maximum(px1, tx1), jnp.maximum(py1, ty1)
    brx, bry = jnp.minimum(px2, tx2), jnp.minimum(py2, ty2)
    area_p = (px2 - px1) * (py2 - py1)
    area_g = (tx2 - tx1) * (ty2 - ty1)
    en = ((tlx < brx) & (tly < bry)).astype(jnp.float32)
    area_i = (brx - tlx) * (bry - tly) * en
    iou = jnp.abs(area_i / (area_p + area_g - area_i + _EPS))

    pcx, pcy = (px1 + px2) / 2, (py1 + py2) / 2
    tcx, tcy = (tx1 + tx2) / 2, (ty1 + ty2) / 2
    ch_c = jnp.maximum(tcy, pcy) - jnp.minimum(tcy, pcy)
    cw_c = jnp.maximum(tcx, pcx) - jnp.minimum(tcx, pcx)
    sigma = jnp.sqrt(cw_c ** 2 + ch_c ** 2)
    x1a = jnp.abs(cw_c) / (sigma + _EPS)
    x2a = jnp.abs(ch_c) / (sigma + _EPS)
    x = jnp.where(x1a > _THRESH, x2a, x1a)
    L = jnp.cos(jnp.arcsin(x) * 2 - np.pi / 2)

    cw_box = jnp.maximum(px2, tx2) - jnp.minimum(px1, tx1)
    ch_box = jnp.maximum(py2, ty2) - jnp.minimum(py1, ty1)
    Px = ((tcx - pcx) / (cw_box + _EPS)) ** 2
    Py = ((tcy - pcy) / (ch_box + _EPS)) ** 2
    gamma = 2 - L
    delta = 1 - jnp.exp(-gamma * Px) + (1 - jnp.exp(-gamma * Py))

    pw, ph = px2 - px1, py2 - py1
    tw, th = tx2 - tx1, ty2 - ty1
    ow = jnp.abs(pw - tw) / (jnp.maximum(pw, tw) + _EPS)
    oh = jnp.abs(ph - th) / (jnp.maximum(ph, th) + _EPS)
    omiga = (1 - jnp.exp(-ow)) ** 4 + (1 - jnp.exp(-oh)) ** 4

    return 1 - iou + (delta * en + omiga * en) / 2


def _make_boxes(key, n):
    k1, k2, k3, k4 = jax.random.split(key, 4)
    p_xy = jax.random.uniform(k1, (n, 2), minval=0.0, maxval=10.0)
    p_wh = jax.random.uniform(k2, (n, 2), minval=0.5, maxval=5.0)
    pred = jnp.concatenate([p_xy, p_xy + p_wh], axis=1)
    t_xy = jax.random.uniform(k3, (n, 2), minval=0.0, maxval=10.0)
    t_wh = jax.random.uniform(k4, (n, 2), minval=0.5, maxval=5.0)
    target = jnp.concatenate([t_xy, t_xy + t_wh], axis=1)
    return pred, target


if __name__ == "__main__":
    key = jax.random.PRNGKey(0)

    # n=8    : single (4, 1, 128) block, heavy lane padding path.
    # n=1024 : exactly 8 rows, no box padding, single block.
    # n=3000 : box padding + 2 grid steps + a partial trailing block.
    # Tolerance 2e-4 covers the Newton-refined approximate reciprocals and the
    # rsqrt / sin-identity reformulations (all ~1e-6 level for these inputs).
    for n in (8, 1024, 3000):
        pred, target = _make_boxes(jax.random.fold_in(key, n), n)
        out = jax.block_until_ready(siou_loss(pred, target))
        ref = jax.block_until_ready(_siou_ref(pred, target))
        assert out.shape == (n,)
        np.testing.assert_allclose(np.asarray(out), np.asarray(ref),
                                   rtol=2e-4, atol=2e-4)

    print("KERNEL_OK")
</pallas_src>

<mosaic_0001>
module attributes {stable_mosaic.version = 11 : i64} {
  func.func @_siou_kernel(%arg0: i32, %arg1: memref<4x1x128xf32, #tpu.memory_space<vmem>>, %arg2: memref<4x1x128xf32, #tpu.memory_space<vmem>>, %arg3: memref<1x128xf32, #tpu.memory_space<vmem>>) attributes {dimension_semantics = [#tpu.dimension_semantics<parallel>], iteration_bounds = array<i64: 1>, scalar_prefetch = 0 : i64, scratch_operands = 0 : i64, tpu.core_type = #tpu.core_type<tc>, window_params = [{transform_indices = @transform_0, window_bounds = array<i64: 4, 1, 128>}, {transform_indices = @transform_1, window_bounds = array<i64: 4, 1, 128>}, {transform_indices = @transform_2, window_bounds = array<i64: 1, 128>}]} {
    %c0 = arith.constant 0 : index
    %c0_0 = arith.constant 0 : index
    %c0_1 = arith.constant 0 : index
    %0 = vector.load %arg1[%c0, %c0_0, %c0_1] : memref<4x1x128xf32, #tpu.memory_space<vmem>>, vector<1x1x128xf32>
    %1 = vector.shape_cast %0 : vector<1x1x128xf32> to vector<1x128xf32>
    %c1 = arith.constant 1 : index
    %c0_2 = arith.constant 0 : index
    %c0_3 = arith.constant 0 : index
    %2 = vector.load %arg1[%c1, %c0_2, %c0_3] : memref<4x1x128xf32, #tpu.memory_space<vmem>>, vector<1x1x128xf32>
    %3 = vector.shape_cast %2 : vector<1x1x128xf32> to vector<1x128xf32>
    %c2 = arith.constant 2 : index
    %c0_4 = arith.constant 0 : index
    %c0_5 = arith.constant 0 : index
    %4 = vector.load %arg1[%c2, %c0_4, %c0_5] : memref<4x1x128xf32, #tpu.memory_space<vmem>>, vector<1x1x128xf32>
    %5 = vector.shape_cast %4 : vector<1x1x128xf32> to vector<1x128xf32>
    %c3 = arith.constant 3 : index
    %c0_6 = arith.constant 0 : index
    %c0_7 = arith.constant 0 : index
    %6 = vector.load %arg1[%c3, %c0_6, %c0_7] : memref<4x1x128xf32, #tpu.memory_space<vmem>>, vector<1x1x128xf32>
    %7 = vector.shape_cast %6 : vector<1x1x128xf32> to vector<1x128xf32>
    %c0_8 = arith.constant 0 : index
    %c0_9 = arith.constant 0 : index
    %c0_10 = arith.constant 0 : index
    %8 = vector.load %arg2[%c0_8, %c0_9, %c0_10] : memref<4x1x128xf32, #tpu.memory_space<vmem>>, vector<1x1x128xf32>
    %9 = vector.shape_cast %8 : vector<1x1x128xf32> to vector<1x128xf32>
    %c1_11 = arith.constant 1 : index
    %c0_12 = arith.constant 0 : index
    %c0_13 = arith.constant 0 : index
    %10 = vector.load %arg2[%c1_11, %c0_12, %c0_13] : memref<4x1x128xf32, #tpu.memory_space<vmem>>, vector<1x1x128xf32>
    %11 = vector.shape_cast %10 : vector<1x1x128xf32> to vector<1x128xf32>
    %c2_14 = arith.constant 2 : index
    %c0_15 = arith.constant 0 : index
    %c0_16 = arith.constant 0 : index
    %12 = vector.load %arg2[%c2_14, %c0_15, %c0_16] : memref<4x1x128xf32, #tpu.memory_space<vmem>>, vector<1x1x128xf32>
    %13 = vector.shape_cast %12 : vector<1x1x128xf32> to vector<1x128xf32>
    %c3_17 = arith.constant 3 : index
    %c0_18 = arith.constant 0 : index
    %c0_19 = arith.constant 0 : index
    %14 = vector.load %arg2[%c3_17, %c0_18, %c0_19] : memref<4x1x128xf32, #tpu.memory_space<vmem>>, vector<1x1x128xf32>
    %15 = vector.shape_cast %14 : vector<1x1x128xf32> to vector<1x128xf32>
    %16 = arith.maximumf %1, %9 : vector<1x128xf32>
    %17 = arith.maximumf %3, %11 : vector<1x128xf32>
    %18 = arith.minimumf %5, %13 : vector<1x128xf32>
    %19 = arith.minimumf %7, %15 : vector<1x128xf32>
    %20 = arith.subf %5, %1 : vector<1x128xf32>
    %21 = arith.subf %7, %3 : vector<1x128xf32>
    %22 = arith.subf %13, %9 : vector<1x128xf32>
    %23 = arith.subf %15, %11 : vector<1x128xf32>
    %24 = arith.mulf %20, %21 : vector<1x128xf32>
    %25 = arith.mulf %22, %23 : vector<1x128xf32>
    %26 = arith.cmpf olt, %16, %18 : vector<1x128xf32>
    %27 = arith.cmpf olt, %17, %19 : vector<1x128xf32>
    %28 = arith.andi %26, %27 : vector<1x128xi1>
    %29 = arith.extui %28 : vector<1x128xi1> to vector<1x128xi32>
    %30 = arith.sitofp %29 : vector<1x128xi32> to vector<1x128xf32>
    %31 = arith.subf %18, %16 : vector<1x128xf32>
    %32 = arith.subf %19, %17 : vector<1x128xf32>
    %33 = arith.mulf %31, %32 : vector<1x128xf32>
    %34 = arith.mulf %33, %30 : vector<1x128xf32>
    %35 = arith.addf %24, %25 : vector<1x128xf32>
    %36 = arith.subf %35, %34 : vector<1x128xf32>
    %cst = arith.constant 1.000000e-16 : f32
    %37 = vector.broadcast %cst : f32 to vector<1x128xf32>
    %38 = arith.addf %36, %37 : vector<1x128xf32>
    %39 = tpu.reciprocal %38 {approx = true} : vector<1x128xf32> -> vector<1x128xf32>
    %40 = arith.mulf %38, %39 : vector<1x128xf32>
    %cst_20 = arith.constant 2.000000e+00 : f32
    %41 = vector.broadcast %cst_20 : f32 to vector<1x128xf32>
    %42 = arith.subf %41, %40 : vector<1x128xf32>
    %43 = arith.mulf %39, %42 : vector<1x128xf32>
    %44 = arith.mulf %34, %43 : vector<1x128xf32>
    %45 = math.absf %44 : vector<1x128xf32>
    %46 = arith.subf %9, %1 : vector<1x128xf32>
    %47 = arith.subf %13, %5 : vector<1x128xf32>
    %48 = arith.addf %46, %47 : vector<1x128xf32>
    %cst_21 = arith.constant 5.000000e-01 : f32
    %49 = vector.broadcast %cst_21 : f32 to vector<1x128xf32>
    %50 = arith.mulf %49, %48 : vector<1x128xf32>
    %51 = arith.subf %11, %3 : vector<1x128xf32>
    %52 = arith.subf %15, %7 : vector<1x128xf32>
    %53 = arith.addf %51, %52 : vector<1x128xf32>
    %cst_22 = arith.constant 5.000000e-01 : f32
    %54 = vector.broadcast %cst_22 : f32 to vector<1x128xf32>
    %55 = arith.mulf %54, %53 : vector<1x128xf32>
    %56 = arith.mulf %50, %50 : vector<1x128xf32>
    %57 = arith.mulf %55, %55 : vector<1x128xf32>
    %58 = arith.addf %56, %57 : vector<1x128xf32>
    %cst_23 = arith.constant 1.000000e-32 : f32
    %59 = vector.broadcast %cst_23 : f32 to vector<1x128xf32>
    %60 = arith.addf %58, %59 : vector<1x128xf32>
    %61 = math.rsqrt %60 : vector<1x128xf32>
    %62 = math.absf %50 : vector<1x128xf32>
    %63 = arith.mulf %62, %61 : vector<1x128xf32>
    %64 = math.absf %55 : vector<1x128xf32>
    %65 = arith.mulf %64, %61 : vector<1x128xf32>
    %cst_24 = arith.constant 0.707106769 : f32
    %66 = vector.broadcast %cst_24 : f32 to vector<1x128xf32>
    %67 = arith.cmpf ogt, %63, %66 : vector<1x128xf32>
    %68 = arith.select %67, %65, %63 : vector<1x128xi1>, vector<1x128xf32>
    %cst_25 = arith.constant 2.000000e+00 : f32
    %69 = vector.broadcast %cst_25 : f32 to vector<1x128xf32>
    %70 = arith.mulf %69, %68 : vector<1x128xf32>
    %71 = arith.mulf %68, %68 : vector<1x128xf32>
    %cst_26 = arith.constant 1.000000e+00 : f32
    %72 = vector.broadcast %cst_26 : f32 to vector<1x128xf32>
    %73 = arith.subf %72, %71 : vector<1x128xf32>
    %cst_27 = arith.constant 0.000000e+00 : f32
    %74 = vector.broadcast %cst_27 : f32 to vector<1x128xf32>
    %75 = arith.maximumf %73, %74 : vector<1x128xf32>
    %76 = math.sqrt %75 : vector<1x128xf32>
    %77 = arith.mulf %70, %76 : vector<1x128xf32>
    %78 = arith.maximumf %5, %13 : vector<1x128xf32>
    %79 = arith.minimumf %1, %9 : vector<1x128xf32>
    %80 = arith.subf %78, %79 : vector<1x128xf32>
    %81 = arith.maximumf %7, %15 : vector<1x128xf32>
    %82 = arith.minimumf %3, %11 : vector<1x128xf32>
    %83 = arith.subf %81, %82 : vector<1x128xf32>
    %cst_28 = arith.constant 1.000000e-16 : f32
    %84 = vector.broadcast %cst_28 : f32 to vector<1x128xf32>
    %85 = arith.addf %80, %84 : vector<1x128xf32>
    %86 = tpu.reciprocal %85 {approx = true} : vector<1x128xf32> -> vector<1x128xf32>
    %87 = arith.mulf %85, %86 : vector<1x128xf32>
    %cst_29 = arith.constant 2.000000e+00 : f32
    %88 = vector.broadcast %cst_29 : f32 to vector<1x128xf32>
    %89 = arith.subf %88, %87 : vector<1x128xf32>
    %90 = arith.mulf %86, %89 : vector<1x128xf32>
    %91 = arith.mulf %50, %90 : vector<1x128xf32>
    %cst_30 = arith.constant 1.000000e-16 : f32
    %92 = vector.broadcast %cst_30 : f32 to vector<1x128xf32>
    %93 = arith.addf %83, %92 : vector<1x128xf32>
    %94 = tpu.reciprocal %93 {approx = true} : vector<1x128xf32> -> vector<1x128xf32>
    %95 = arith.mulf %93, %94 : vector<1x128xf32>
    %cst_31 = arith.constant 2.000000e+00 : f32
    %96 = vector.broadcast %cst_31 : f32 to vector<1x128xf32>
    %97 = arith.subf %96, %95 : vector<1x128xf32>
    %98 = arith.mulf %94, %97 : vector<1x128xf32>
    %99 = arith.mulf %55, %98 : vector<1x128xf32>
    %cst_32 = arith.constant 2.000000e+00 : f32
    %100 = vector.broadcast %cst_32 : f32 to vector<1x128xf32>
    %101 = arith.subf %77, %100 : vector<1x128xf32>
    %102 = arith.mulf %91, %91 : vector<1x128xf32>
    %103 = arith.mulf %101, %102 : vector<1x128xf32>
    %104 = math.exp %103 : vector<1x128xf32>
    %cst_33 = arith.constant 2.000000e+00 : f32
    %105 = vector.broadcast %cst_33 : f32 to vector<1x128xf32>
    %106 = arith.subf %105, %104 : vector<1x128xf32>
    %107 = arith.mulf %99, %99 : vector<1x128xf32>
    %108 = arith.mulf %101, %107 : vector<1x128xf32>
    %109 = math.exp %108 : vector<1x128xf32>
    %110 = arith.subf %106, %109 : vector<1x128xf32>
    %111 = arith.subf %20, %22 : vector<1x128xf32>
    %112 = math.absf %111 : vector<1x128xf32>
    %113 = arith.maximumf %20, %22 : vector<1x128xf32>
    %cst_34 = arith.constant 1.000000e-16 : f32
    %114 = vector.broadcast %cst_34 : f32 to vector<1x128xf32>
    %115 = arith.addf %113, %114 : vector<1x128xf32>
    %116 = tpu.reciprocal %115 {approx = true} : vector<1x128xf32> -> vector<1x128xf32>
    %117 = arith.mulf %115, %116 : vector<1x128xf32>
    %cst_35 = arith.constant 2.000000e+00 : f32
    %118 = vector.broadcast %cst_35 : f32 to vector<1x128xf32>
    %119 = arith.subf %118, %117 : vector<1x128xf32>
    %120 = arith.mulf %116, %119 : vector<1x128xf32>
    %121 = arith.mulf %112, %120 : vector<1x128xf32>
    %122 = arith.subf %21, %23 : vector<1x128xf32>
    %123 = math.absf %122 : vector<1x128xf32>
    %124 = arith.maximumf %21, %23 : vector<1x128xf32>
    %cst_36 = arith.constant 1.000000e-16 : f32
    %125 = vector.broadcast %cst_36 : f32 to vector<1x128xf32>
    %126 = arith.addf %124, %125 : vector<1x128xf32>
    %127 = tpu.reciprocal %126 {approx = true} : vector<1x128xf32> -> vector<1x128xf32>
    %128 = arith.mulf %126, %127 : vector<1x128xf32>
    %cst_37 = arith.constant 2.000000e+00 : f32
    %129 = vector.broadcast %cst_37 : f32 to vector<1x128xf32>
    %130 = arith.subf %129, %128 : vector<1x128xf32>
    %131 = arith.mulf %127, %130 : vector<1x128xf32>
    %132 = arith.mulf %123, %131 : vector<1x128xf32>
    %cst_38 = arith.constant 0.000000e+00 : f32
    %133 = vector.broadcast %cst_38 : f32 to vector<1x128xf32>
    %134 = arith.subf %133, %121 : vector<1x128xf32>
    %135 = math.exp %134 : vector<1x128xf32>
    %cst_39 = arith.constant 1.000000e+00 : f32
    %136 = vector.broadcast %cst_39 : f32 to vector<1x128xf32>
    %137 = arith.subf %136, %135 : vector<1x128xf32>
    %cst_40 = arith.constant 0.000000e+00 : f32
    %138 = vector.broadcast %cst_40 : f32 to vector<1x128xf32>
    %139 = arith.subf %138, %132 : vector<1x128xf32>
    %140 = math.exp %139 : vector<1x128xf32>
    %cst_41 = arith.constant 1.000000e+00 : f32
    %141 = vector.broadcast %cst_41 : f32 to vector<1x128xf32>
    %142 = arith.subf %141, %140 : vector<1x128xf32>
    %143 = arith.mulf %137, %137 : vector<1x128xf32>
    %144 = arith.mulf %142, %142 : vector<1x128xf32>
    %145 = arith.mulf %143, %143 : vector<1x128xf32>
    %146 = arith.mulf %144, %144 : vector<1x128xf32>
    %147 = arith.addf %145, %146 : vector<1x128xf32>
    %cst_42 = arith.constant 1.000000e+00 : f32
    %148 = vector.broadcast %cst_42 : f32 to vector<1x128xf32>
    %149 = arith.subf %148, %45 : vector<1x128xf32>
    %150 = arith.addf %110, %147 : vector<1x128xf32>
    %cst_43 = arith.constant 5.000000e-01 : f32
    %151 = vector.broadcast %cst_43 : f32 to vector<1x128xf32>
    %152 = arith.mulf %151, %30 : vector<1x128xf32>
    %153 = arith.mulf %150, %152 : vector<1x128xf32>
    %154 = arith.addf %149, %153 : vector<1x128xf32>
    %c0_44 = arith.constant 0 : index
    %c0_45 = arith.constant 0 : index
    %155 = vector.load %arg3[%c0_44, %c0_45] : memref<1x128xf32, #tpu.memory_space<vmem>>, vector<1x128xf32>
    tpu.vector_store %arg3[%c0_44, %c0_45], %154 {strides = array<i32>} : memref<1x128xf32, #tpu.memory_space<vmem>>, vector<1x128xf32>,
    return
  }
  func.func @transform_0(%arg0: i32) -> (i32, i32, i32) {
    %c0_i32 = arith.constant 0 : i32
    %c0_i32_0 = arith.constant 0 : i32
    %c0_i32_1 = arith.constant 0 : i32
    return %c0_i32, %arg0, %c0_i32_0 : i32, i32, i32
  }
  func.func @transform_1(%arg0: i32) -> (i32, i32, i32) {
    %c0_i32 = arith.constant 0 : i32
    %c0_i32_0 = arith.constant 0 : i32
    %c0_i32_1 = arith.constant 0 : i32
    return %c0_i32, %arg0, %c0_i32_0 : i32, i32, i32
  }
  func.func @transform_2(%arg0: i32) -> (i32, i32) {
    %c0_i32 = arith.constant 0 : i32
    %c0_i32_0 = arith.constant 0 : i32
    return %arg0, %c0_i32 : i32, i32
  }
}

</mosaic_0001>

<bundles_post_ra>
// kernel: siou_loss.1
= control target key start
LH: loop header
LB: loop body
LE: loop exit
PB: predicated region body
PF: predicated region fallthrough
CT: control target
= control target key end

     0   :  { %v185_v54 = vmov 0.0   ;;  %s244_s0 = inlined_call_operand.vmem [shape: f32[4,1,128], index: 0, kind: input, shape index: {}]   ;;  %s245_s1 = inlined_call_operand.vmem [shape: f32[4,1,128], index: 1, kind: input, shape index: {}]   ;;  %s246_s2 = inlined_call_operand.vmem [shape: f32[1,128], index: 2, kind: output, shape index: {}]  }
   0x1   :  { %v11_v0 = vld [vmem:[%s244_s0] sm:$0x1]  ;;  %v154_v1 = vld [vmem:[%s244_s0 + $0x1] sm:$0x1]  ;;  %v155_v2 = vld [vmem:[%s244_s0 + $0x2] sm:$0x1] }
   0x2   :  { %v156_v3 = vld [vmem:[%s244_s0 + $0x3] sm:$0x1]  ;;  %v18_v4 = vld [vmem:[%s245_s1] sm:$0x1]  ;;  %v157_v5 = vld [vmem:[%s245_s1 + $0x1] sm:$0x1]  ;;  %v29_v12 = vsub.f32 %v155_v2, %v11_v0 }
   0x3   :  { %v158_v6 = vld [vmem:[%s245_s1 + $0x2] sm:$0x1]  ;;  %v159_v7 = vld [vmem:[%s245_s1 + $0x3] sm:$0x1]  ;;  %v53_v8 = vsub.f32 %v18_v4, %v11_v0  ;;  %v57_v10 = vsub.f32 %v157_v5, %v154_v1  ;;  %v30_v18 = vsub.f32 %v156_v3, %v154_v1  ;;  %v85_v24 = vmin.f32 %v11_v0, %v18_v4 }
   0x4   :  { %v54_v9 = vsub.f32 %v158_v6, %v155_v2  ;;  %v58_v11 = vsub.f32 %v159_v7, %v156_v3  ;;  %v31_v13 = vsub.f32 %v158_v6, %v18_v4  ;;  %v32_v19 = vsub.f32 %v159_v7, %v157_v5 }
   0x5   :  { %v84_v23 = vmax.f32 %v155_v2, %v158_v6  ;;  %v87_v26 = vmax.f32 %v156_v3, %v159_v7  ;;  %v88_v27 = vmin.f32 %v154_v1, %v157_v5  ;;  %v25_v34 = vmax.f32 %v11_v0, %v18_v4 }
   0x6   :  { %v55_v14 = vadd.f32 %v54_v9, %v53_v8  ;;  %v59_v15 = vadd.f32 %v58_v11, %v57_v10  ;;  %v115_v20 = vmax.f32 %v29_v12, %v31_v13  ;;  %v124_v29 = vmax.f32 %v30_v18, %v32_v19 }
   0x7   :  { %v86_v31 = vsub.f32 %v84_v23, %v85_v24  ;;  %v89_v33 = vsub.f32 %v87_v26, %v88_v27  ;;  %v26_v35 = vmax.f32 %v154_v1, %v157_v5  ;;  %v27_v36 = vmin.f32 %v155_v2, %v158_v6 }
   0x8   :  { %v225_v16 = vmul.f32 0.5, %v55_v14  ;;  %v227_v17 = vmul.f32 0.5, %v59_v15  ;;  %v116_v28 = vadd.f32 1e-16, %v115_v20  ;;  %v125_v32 = vadd.f32 1e-16, %v124_v29 }
   0x9   :  { %v28_v37 = vmin.f32 %v156_v3, %v159_v7  ;;  %v90_v38 = vadd.f32 1e-16, %v86_v31  ;;  %v96_v39 = vadd.f32 1e-16, %v89_v33  ;;  %vm35_vm0 = vcmp.lt.f32.partialorder %v25_v34, %v27_v36 }
   0xa   :  { %v61_v21 = vmul.f32 %v225_v16, %v225_v16  ;;  %v62_v22 = vmul.f32 %v227_v17, %v227_v17  ;;  %163 = vrcp.f32 %v116_v28  ;;  %v40_v40 = vsub.f32 %v27_v36, %v25_v34 }
   0xb   :  { %vm36_vm1 = vcmp.lt.f32.partialorder %v26_v35, %v28_v37  ;;  %v41_v41 = vsub.f32 %v28_v37, %v26_v35  ;;  %v66_v43 = vand.u32 2147483647, %v225_v16  ;;  %v68_v44 = vand.u32 2147483647, %v227_v17 }
   0xc   :  { %v63_v25 = vadd.f32 %v62_v22, %v61_v21  ;;  %vm37_vm2 = vmand %vm35_vm0, %vm36_vm1  ;;  %v33_v46 = vmul.f32 %v30_v18, %v29_v12  ;;  %v34_v47 = vmul.f32 %v32_v19, %v31_v13  ;;  %v113_v48 = vsub.f32 %v29_v12, %v31_v13 }
   0xd   :  { %v42_v50 = vmul.f32 %v41_v41, %v40_v40  ;;  %v122_v52 = vsub.f32 %v30_v18, %v32_v19  ;;  %v235_v55 = vsel %vm37_vm2, 1.0, %v185_v54 }
   0xe   :  { %v64_v30 = vadd.f32 1e-32, %v63_v25  ;;  %v44_v59 = vadd.f32 %v34_v47, %v33_v46  ;;  %v114_v60 = vand.u32 2147483647, %v113_v48 }
   0xf   :  { %v43_v62 = vmul.f32 %v235_v55, %v42_v50  ;;  %v123_v0 = vand.u32 2147483647, %v122_v52 }
  0x10   :  { %165 = vrsqrt.f32 %v64_v30 }
  0x11   :  { %167 = vrcp.f32 %v125_v32  ;;  %v45_v8 = vsub.f32 %v44_v59, %v43_v62 }
  0x12   :  { %169 = vrcp.f32 %v90_v38 }
  0x13   :  { %171 = vrcp.f32 %v96_v39  ;;  %v46_v14 = vadd.f32 1e-16, %v45_v8 }
  0x14   :  { %v164_v42 = vpop.eup %163 }
  0x15   :  { %v118_v45 = vmul.f32 %v164_v42, %v116_v28 }
  0x17   :  { %v119_v51 = vsub.f32 2.0, %v118_v45 }
  0x19   :  { %v120_v61 = vmul.f32 %v164_v42, %v119_v51 }
  0x1a   :  { %v166_v49 = vpop.eup %165 }
  0x1b   :  { %v168_v53 = vpop.eup %167  ;;  %v67_v56 = vmul.f32 %v166_v49, %v66_v43  ;;  %v69_v57 = vmul.f32 %v166_v49, %v68_v44  ;;  %v121_v7 = vmul.f32 %v120_v61, %v114_v60 }
  0x1c   :  { %v127_v58 = vmul.f32 %v168_v53, %v125_v32  ;;  %v170_v3 = vpop.eup %169 }
  0x1d   :  { %vm70_vm3 = vcmp.gt.f32.partialorder %v67_v56, 0.70710677  ;;  %v172_v5 = vpop.eup %171  ;;  %v92_v11 = vmul.f32 %v170_v3, %v90_v38  ;;  %v131_v13 = vsub.f32 0.0, %v121_v7 }
  0x1e   :  { %v71_v63 = vsel %vm70_vm3, %v69_v57, %v67_v56  ;;  %v128_v1 = vsub.f32 2.0, %v127_v58  ;;  %v98_v12 = vmul.f32 %v172_v5, %v96_v39  ;;  %v146_v58 = vmul.f32 0.5, %v235_v55 }
  0x1f   :  { %v73_v2 = vmul.f32 %v71_v63, %v71_v63  ;;  %v93_v18 = vsub.f32 2.0, %v92_v11  ;;  %v132_v20 = vmul.f32 1.442695, %v131_v13  ;;  %v72_v27 = vmul.f32 2.0, %v71_v63 }
  0x20   :  { %v129_v4 = vmul.f32 %v168_v53, %v128_v1  ;;  %v99_v19 = vsub.f32 2.0, %v98_v12 }
  0x21   :  { %v74_v6 = vsub.f32 1.0, %v73_v2  ;;  %v94_v22 = vmul.f32 %v170_v3, %v93_v18 }
  0x22   :  { %v130_v9 = vmul.f32 %v129_v4, %v123_v0  ;;  %v100_v23 = vmul.f32 %v172_v5, %v99_v19 }
  0x23   :  { %v75_v10 = vmax.f32 %v74_v6, 0.0  ;;  %v95_v26 = vmul.f32 %v94_v22, %v225_v16 }
  0x24   :  { %v135_v15 = vsub.f32 0.0, %v130_v9  ;;  %v101_v29 = vmul.f32 %v100_v23, %v227_v17 }
  0x25   :  { %173 = vrsqrt.f32 %v75_v10  ;;  %vm78_vm4 = vcmp.eq.f32.partialorder %v75_v10, inf  ;;  %v81_v25 = vand.u32 2147483648, %v75_v10  ;;  %vm80_vm5 = vcmp.eq.f32.partialorder %v75_v10, 0.0 }
  0x26   :  { %175 = vrcp.f32 %v46_v14  ;;  %v136_v21 = vmul.f32 1.442695, %v135_v15  ;;  %v103_v34 = vmul.f32 %v95_v26, %v95_v26  ;;  %v108_v35 = vmul.f32 %v101_v29, %v101_v29 }
  0x27   :  { %177 = vpow2.f32 %v132_v20 }
  0x28   :  { %179 = vpow2.f32 %v136_v21 }
  0x2f   :  { %v174_v24 = vpop.eup %173 }
  0x30   :  { %v77_v28 = vmul.f32 %v174_v24, %v75_v10  ;;  %v176_v32 = vpop.eup %175 }
  0x31   :  { %v178_v37 = vpop.eup %177  ;;  %v48_v38 = vmul.f32 %v176_v32, %v46_v14 }
  0x32   :  { %v79_v30 = vsel %vm78_vm4, %v75_v10, %v77_v28  ;;  %v180_v39 = vpop.eup %179  ;;  %v134_v44 = vsub.f32 1.0, %v178_v37 }
  0x33   :  { %v82_v31 = vsel %vm80_vm5, %v81_v25, %v79_v30  ;;  %v49_v16 = vsub.f32 2.0, %v48_v38  ;;  %v138_v45 = vsub.f32 1.0, %v180_v39 }
  0x34   :  { %v83_v33 = vmul.f32 %v82_v31, %v72_v27  ;;  %v139_v46 = vmul.f32 %v134_v44, %v134_v44 }
  0x35   :  { %v50_v17 = vmul.f32 %v176_v32, %v49_v16  ;;  %v140_v47 = vmul.f32 %v138_v45, %v138_v45 }
  0x36   :  { %v161_v36 = vadd.f32 -2.0, %v83_v33  ;;  %v141_v49 = vmul.f32 %v139_v46, %v139_v46 }
  0x37   :  { %v51_v48 = vmul.f32 %v50_v17, %v43_v62  ;;  %v142_v50 = vmul.f32 %v140_v47, %v140_v47 }
  0x38   :  { %v104_v40 = vmul.f32 %v161_v36, %v103_v34  ;;  %v109_v41 = vmul.f32 %v161_v36, %v108_v35 }
  0x39   :  { %v52_v53 = vand.u32 2147483647, %v51_v48  ;;  %v143_v56 = vadd.f32 %v142_v50, %v141_v49 }
  0x3a   :  { %v105_v42 = vmul.f32 1.442695, %v104_v40  ;;  %v110_v43 = vmul.f32 1.442695, %v109_v41 }
  0x3b   :  { %v144_v59 = vsub.f32 1.0, %v52_v53 }
  0x3c   :  { %181 = vpow2.f32 %v105_v42 }
  0x3d   :  { %183 = vpow2.f32 %v110_v43 }
  0x46   :  { %v182_v51 = vpop.eup %181 }
  0x47   :  { %v184_v52 = vpop.eup %183  ;;  %v107_v54 = vsub.f32 2.0, %v182_v51 }
  0x49   :  { %v112_v57 = vsub.f32 %v107_v54, %v184_v52 }
  0x4b   :  { %v145_v60 = vadd.f32 %v143_v56, %v112_v57 }
  0x4d   :  { %v147_v61 = vmul.f32 %v146_v58, %v145_v60 }
  0x4f   :  { %v148_v63 = vadd.f32 %v147_v61, %v144_v59 }
  0x51   :  { %149 = vst [vmem:[%s246_s2] sm:$0x1] %v148_v63 }

</bundles_post_ra>
